<compile_context>
chip_gen: v5e
topology: v5e:2x2
jax: 0.10.0
libtpu: 0.0.40
codegen_flags: <defaults>
</compile_context>

<pallas_src>
import math

import jax
import jax.numpy as jnp
from jax import lax
from jax.experimental import pallas as pl
from jax.experimental.pallas import tpu as pltpu


def _round_up(x, m):
    return (x + m - 1) // m * m


def _discriminator_kernel(x_ref, s_ref, w_ref, o_ref, acc_ref):
    j = pl.program_id(1)

    @pl.when(j == 0)
    def _init():
        acc_ref[...] = jnp.zeros_like(acc_ref)

    # h tile: (TB, TN) = summary(TB, H_pad) @ W(H_pad, TN)   (MXU, f32 accumulate)
    h = jnp.dot(s_ref[...], w_ref[...], preferred_element_type=jnp.float32)
    # partial row-sums over this weight-column tile -> accumulate into scratch
    acc_ref[...] += jnp.sum(x_ref[...] * h, axis=1, keepdims=True)

    @pl.when(j == pl.num_programs(1) - 1)
    def _finalize():
        tb = acc_ref.shape[0]
        col = acc_ref[...]                                   # (TB, 1)
        # Relayout the (TB, 1) sublane column into a lane-dense (1, TB) row using
        # only guaranteed-supported ops (iota + where + sublane reduce); runs once
        # per batch tile so its cost is negligible.
        rows = lax.broadcasted_iota(jnp.int32, (tb, tb), 0)
        cols = lax.broadcasted_iota(jnp.int32, (tb, tb), 1)
        diag = jnp.where(rows == cols, col, 0.0)             # (TB, TB)
        o_ref[0] = jnp.sum(diag, axis=0, keepdims=True).astype(o_ref.dtype)


def discriminator_forward(x, summary, weight, *, block_b=128,
                          max_w_tile_bytes=8 * 1024 * 1024):
    """x: (B, H), summary: (B, H), weight: (H, H) -> (B,) float32."""
    B, H = x.shape
    assert summary.shape == (B, H)
    assert weight.shape == (H, H)

    # ---- tile sizes ------------------------------------------------------
    # Batch tile: multiple of 8 sublanes, up to block_b (128 feeds the MXU M dim).
    TB = min(block_b, _round_up(B, 8))
    B_pad = _round_up(B, TB)

    # Weight column tile: multiple of 128 lanes, sized so the f32 (H_pad, TN)
    # block stays <= max_w_tile_bytes (8 MiB default is v7x-safe; raise on v5e/v6e).
    h128 = _round_up(H, 128)
    tn_cap = max(128, (max_w_tile_bytes // (4 * h128)) // 128 * 128)
    TN = min(h128, tn_cap)
    H_pad = _round_up(H, TN)

    nb = B_pad // TB
    nj = H_pad // TN
    # Note: the contraction (K = H) axis is kept whole per batch tile; for
    # extremely large H one would additionally tile K with a second accumulator.

    # ---- zero-pad to tile boundaries (zero padding contributes 0 to the sums) ----
    def _pad2(a, r, c):
        pr, pc = r - a.shape[0], c - a.shape[1]
        return jnp.pad(a, ((0, pr), (0, pc))) if (pr or pc) else a

    xp = _pad2(x.astype(jnp.float32), B_pad, H_pad)
    sp = _pad2(summary.astype(jnp.float32), B_pad, H_pad)
    wp = _pad2(weight.astype(jnp.float32), H_pad, H_pad)

    # ---- VMEM budget: double-buffered inputs/output + resident scratch ----
    need = 2 * 4 * (TB * TN + TB * H_pad + H_pad * TN + TB) + 4 * TB
    vmem_limit = int(min(64 * 1024 * 1024, max(32 * 1024 * 1024, 2 * need)))

    cost = pl.CostEstimate(
        flops=2 * B * H * H + 2 * B * H,
        transcendentals=0,
        bytes_accessed=4 * (2 * B * H + H * H + B),
    )

    out = pl.pallas_call(
        _discriminator_kernel,
        out_shape=jax.ShapeDtypeStruct((nb, 1, TB), jnp.float32),
        grid_spec=pltpu.PrefetchScalarGridSpec(
            num_scalar_prefetch=0,
            grid=(nb, nj),
            in_specs=[
                pl.BlockSpec((TB, TN), lambda i, j: (i, j)),      # x
                pl.BlockSpec((TB, H_pad), lambda i, j: (i, 0)),   # summary (K resident)
                pl.BlockSpec((H_pad, TN), lambda i, j: (0, j)),   # weight (streamed over j)
            ],
            out_specs=pl.BlockSpec((1, 1, TB), lambda i, j: (i, 0, 0)),
            scratch_shapes=[pltpu.VMEM((TB, 1), jnp.float32)],
        ),
        compiler_params=pltpu.CompilerParams(
            dimension_semantics=("parallel", "arbitrary"),
            vmem_limit_bytes=vmem_limit,
        ),
        cost_estimate=cost,
    )(xp, sp, wp)

    return out.reshape(B_pad)[:B]


def init_weight(hidden_dim, key):
    # Mirrors torch_geometric's `uniform(size, tensor)`:
    #   bound = 1 / sqrt(size); tensor.uniform_(-bound, bound)
    bound = 1.0 / math.sqrt(hidden_dim)
    return jax.random.uniform(
        key, (hidden_dim, hidden_dim), dtype=jnp.float32,
        minval=-bound, maxval=bound,
    )


if __name__ == "__main__":
    key = jax.random.PRNGKey(0)
    k_w, k_x, k_s, k_w2, k_x2, k_s2 = jax.random.split(key, 6)

    # --- Test 1: module-sized shapes (batch=8, hidden_dim=32), real init ----
    B, H = 8, 32
    weight = init_weight(H, k_w)
    x = jax.random.normal(k_x, (B, H), dtype=jnp.float32)
    summary = jax.random.normal(k_s, (B, H), dtype=jnp.float32)

    out = jax.block_until_ready(discriminator_forward(x, summary, weight))
    ref = jnp.sum(x * (summary @ weight), axis=1)
    assert out.shape == (B,)
    assert jnp.allclose(out, ref, atol=1e-4, rtol=1e-4), (out, ref)

    # --- Test 2: multi-tile grid (batch padding + j-axis accumulation) -----
    # Integer-valued inputs in {-1, 0, 1} keep every intermediate exactly
    # representable, so this validates the tiling/accumulation/relayout logic
    # independent of matmul precision mode.
    B2, H2 = 300, 256
    x2 = jax.random.randint(k_x2, (B2, H2), -1, 2).astype(jnp.float32)
    s2 = jax.random.randint(k_s2, (B2, H2), -1, 2).astype(jnp.float32)
    w2 = jax.random.randint(k_w2, (H2, H2), -1, 2).astype(jnp.float32)

    out2 = jax.block_until_ready(
        discriminator_forward(x2, s2, w2, max_w_tile_bytes=64 * 1024)  # forces TN=128, nj=2
    )
    ref2 = jnp.sum(x2 * (s2 @ w2), axis=1)
    assert out2.shape == (B2,)
    assert jnp.allclose(out2, ref2, atol=1e-3, rtol=1e-6), (out2, ref2)

    print("KERNEL_OK")
</pallas_src>

<mosaic_0001>
module attributes {stable_mosaic.version = 11 : i64} {
  func.func @_discriminator_kernel(%arg0: i32, %arg1: i32, %arg2: memref<8x128xf32, #tpu.memory_space<vmem>>, %arg3: memref<8x128xf32, #tpu.memory_space<vmem>>, %arg4: memref<128x128xf32, #tpu.memory_space<vmem>>, %arg5: memref<1x1x8xf32, #tpu.memory_space<vmem>>, %arg6: memref<8x1xf32, #tpu.memory_space<vmem>>) attributes {dimension_semantics = [#tpu.dimension_semantics<parallel>, #tpu.dimension_semantics<arbitrary>], iteration_bounds = array<i64: 1, 1>, scalar_prefetch = 0 : i64, scratch_operands = 1 : i64, tpu.core_type = #tpu.core_type<tc>, window_params = [{transform_indices = @transform_0, window_bounds = array<i64: 8, 128>}, {transform_indices = @transform_1, window_bounds = array<i64: 8, 128>}, {transform_indices = @transform_2, window_bounds = array<i64: 128, 128>}, {transform_indices = @transform_3, window_bounds = array<i64: 1, 1, 8>}]} {
    %c0_i32 = arith.constant 0 : i32
    %0 = arith.cmpi eq, %arg1, %c0_i32 : i32
    %1 = arith.extui %0 : i1 to i32
    %c0_i32_0 = arith.constant 0 : i32
    %2 = arith.cmpi ne, %1, %c0_i32_0 : i32
    scf.if %2 {
      %cst_13 = arith.constant 0.000000e+00 : f32
      %16 = vector.broadcast %cst_13 : f32 to vector<8x1xf32>
      %c0_14 = arith.constant 0 : index
      %c0_15 = arith.constant 0 : index
      %17 = vector.load %arg6[%c0_14, %c0_15] : memref<8x1xf32, #tpu.memory_space<vmem>>, vector<8x1xf32>
      tpu.vector_store %arg6[%c0_14, %c0_15], %16 {strides = array<i32>} : memref<8x1xf32, #tpu.memory_space<vmem>>, vector<8x1xf32>,
    } else {
    }
    %c0 = arith.constant 0 : index
    %c0_1 = arith.constant 0 : index
    %3 = vector.load %arg3[%c0, %c0_1] : memref<8x128xf32, #tpu.memory_space<vmem>>, vector<8x128xf32>
    %c0_2 = arith.constant 0 : index
    %c0_3 = arith.constant 0 : index
    %4 = vector.load %arg4[%c0_2, %c0_3] : memref<128x128xf32, #tpu.memory_space<vmem>>, vector<128x128xf32>
    %cst = arith.constant dense<0.000000e+00> : vector<8x128xf32>
    %5 = tpu.matmul %3, %4, %cst {dimension_numbers = #tpu.dot_dimension_numbers<[1], [0], [0], [1], [0, 0, 1, 1], [], []>} : vector<8x128xf32>, vector<128x128xf32>, vector<8x128xf32> -> vector<8x128xf32>
    %c0_4 = arith.constant 0 : index
    %c0_5 = arith.constant 0 : index
    %6 = vector.load %arg6[%c0_4, %c0_5] : memref<8x1xf32, #tpu.memory_space<vmem>>, vector<8x1xf32>
    %c0_6 = arith.constant 0 : index
    %c0_7 = arith.constant 0 : index
    %7 = vector.load %arg2[%c0_6, %c0_7] : memref<8x128xf32, #tpu.memory_space<vmem>>, vector<8x128xf32>
    %8 = arith.mulf %7, %5 : vector<8x128xf32>
    %cst_8 = arith.constant dense<0.000000e+00> : vector<8xf32>
    %9 = vector.multi_reduction <add>, %8, %cst_8 [1] : vector<8x128xf32> to vector<8xf32>
    %10 = vector.shape_cast %9 : vector<8xf32> to vector<8x1xf32>
    %11 = arith.addf %6, %10 : vector<8x1xf32>
    %c0_9 = arith.constant 0 : index
    %c0_10 = arith.constant 0 : index
    %12 = vector.load %arg6[%c0_9, %c0_10] : memref<8x1xf32, #tpu.memory_space<vmem>>, vector<8x1xf32>
    tpu.vector_store %arg6[%c0_9, %c0_10], %11 {strides = array<i32>} : memref<8x1xf32, #tpu.memory_space<vmem>>, vector<8x1xf32>,
    %c0_i32_11 = arith.constant 0 : i32
    %13 = arith.cmpi eq, %arg1, %c0_i32_11 : i32
    %14 = arith.extui %13 : i1 to i32
    %c0_i32_12 = arith.constant 0 : i32
    %15 = arith.cmpi ne, %14, %c0_i32_12 : i32
    scf.if %15 {
      %c0_13 = arith.constant 0 : index
      %c0_14 = arith.constant 0 : index
      %16 = vector.load %arg6[%c0_13, %c0_14] : memref<8x1xf32, #tpu.memory_space<vmem>>, vector<8x1xf32>
      %17 = tpu.iota {dimensions = array<i32: 0>} : vector<8x8xi32>
      %18 = tpu.iota {dimensions = array<i32: 1>} : vector<8x8xi32>
      %19 = arith.cmpi eq, %17, %18 : vector<8x8xi32>
      %cst_15 = arith.constant 0.000000e+00 : f32
      %20 = vector.shape_cast %16 : vector<8x1xf32> to vector<8x1xf32>
      %21 = vector.broadcast %20 : vector<8x1xf32> to vector<8x8xf32>
      %22 = vector.broadcast %cst_15 : f32 to vector<8x8xf32>
      %23 = arith.select %19, %21, %22 : vector<8x8xi1>, vector<8x8xf32>
      %cst_16 = arith.constant dense<0.000000e+00> : vector<8xf32>
      %24 = vector.multi_reduction <add>, %23, %cst_16 [0] : vector<8x8xf32> to vector<8xf32>
      %25 = vector.shape_cast %24 : vector<8xf32> to vector<1x8xf32>
      %c0_17 = arith.constant 0 : index
      %c0_18 = arith.constant 0 : index
      %c0_19 = arith.constant 0 : index
      %26 = vector.load %arg5[%c0_17, %c0_18, %c0_19] : memref<1x1x8xf32, #tpu.memory_space<vmem>>, vector<1x1x8xf32>
      %27 = vector.shape_cast %26 : vector<1x1x8xf32> to vector<1x8xf32>
      %28 = vector.shape_cast %25 : vector<1x8xf32> to vector<1x1x8xf32>
      tpu.vector_store %arg5[%c0_17, %c0_18, %c0_19], %28 {strides = array<i32>} : memref<1x1x8xf32, #tpu.memory_space<vmem>>, vector<1x1x8xf32>,
    } else {
    }
    return
  }
  func.func @transform_0(%arg0: i32, %arg1: i32) -> (i32, i32) {
    %c0_i32 = arith.constant 0 : i32
    return %arg0, %arg1 : i32, i32
  }
  func.func @transform_1(%arg0: i32, %arg1: i32) -> (i32, i32) {
    %c0_i32 = arith.constant 0 : i32
    %c0_i32_0 = arith.constant 0 : i32
    return %arg0, %c0_i32 : i32, i32
  }
  func.func @transform_2(%arg0: i32, %arg1: i32) -> (i32, i32) {
    %c0_i32 = arith.constant 0 : i32
    %c0_i32_0 = arith.constant 0 : i32
    return %c0_i32, %arg1 : i32, i32
  }
  func.func @transform_3(%arg0: i32, %arg1: i32) -> (i32, i32, i32) {
    %c0_i32 = arith.constant 0 : i32
    %c0_i32_0 = arith.constant 0 : i32
    %c0_i32_1 = arith.constant 0 : i32
    return %arg0, %c0_i32, %c0_i32_0 : i32, i32, i32
  }
}

</mosaic_0001>

<bundles_post_ra>
// kernel: tpu_custom_call.1
= control target key start
LH: loop header
LB: loop body
LE: loop exit
PB: predicated region body
PF: predicated region fallthrough
CT: control target
= control target key end

     0   :  { %8 = vsyncpa [#allocation4], 0  ;;  %s303_s0 = inlined_call_operand.hbm [shape: f32[8,128], index: 0, kind: input, shape index: {}]   ;;  %s304_s1 = inlined_call_operand.hbm [shape: f32[8,128], index: 1, kind: input, shape index: {}]   ;;  %s305_s2 = inlined_call_operand.hbm [shape: f32[128,128], index: 2, kind: input, shape index: {}]   ;;  %s306_s3 = inlined_call_operand.hbm [shape: f32[1,1,8], index: 3, kind: output, shape index: {}]  }
   0x1   :  { %9 = vsyncpa [#allocation7], 0  ;;  %s27_s14 = sshll.u32 %s304_s1, 4  ;;  %s28_s14 = int_to_ptr.hbm [resolvable:$true] %s27_s14 }
   0x2   :  { %10 = vsyncpa [#allocation5], 0  ;;  %s263_s15 = smov [#allocation6]   ;;  %s16_s19 = sshll.u32 %s303_s0, 4  ;;  %s17_s19 = int_to_ptr.hbm [resolvable:$true] %s16_s19 }
   0x3   :  { %s29_s16 = sshll.u32 %s263_s15, 4  ;;  %s264_s20 = smov [#allocation3]   ;;  %s30_s16 = int_to_ptr.vmem [resolvable:$true] %s29_s16 }
   0x4   :  { %32 = dma.hbm_to_vmem [thread:$0]  %s28_s14, 128, %s30_s16, [#allocation7]  }
   0x5   :  { %s18_s21 = sshll.u32 %s264_s20, 4  ;;  %s37_s24 = sshll.u32 %s305_s2, 4  ;;  %s19_s21 = int_to_ptr.vmem [resolvable:$true] %s18_s21  ;;  %s38_s24 = int_to_ptr.hbm [resolvable:$true] %s37_s24 }
   0x6   :  { %21 = dma.hbm_to_vmem [thread:$0]  %s17_s19, 128, %s19_s21, [#allocation4]  }
   0x7   :  { %s265_s1 = smov [#allocation8]   ;;  %s266_s26 = smov 128  }
   0x8   :  { %s39_s25 = sshll.u32 %s265_s1, 4  ;;  %s267_s27 = smov 8   ;;  %s40_s25 = int_to_ptr.vmem [resolvable:$true] %s39_s25 }
   0x9   :  { %45 = dma.hbm_to_vmem [thread:$0]  %s38_s24, 2048, %s40_s25, [#allocation7], %s266_s26, %s266_s26, %s267_s27  }
   0xa   :  { %257 = dma.done.wait [#allocation4], 128  }
   0xb   :  { %258 = vsyncadd [#allocation4], 4294967168 }
   0xc   :  { %259 = dma.done.wait [#allocation7], 2176  }
   0xd   :  { %260 = vsyncadd [#allocation7], 4294965120  ;;  %v80_v0 = vld [vmem:[#allocation8 + $0x78] sm:$0xff]  ;;  %v79_v1 = vld [vmem:[#allocation8 + $0x70] sm:$0xff]  ;;  %vm62_vm0 = vcmask 7168   ;;  %v268_v17 = vmov 0.0   ;;  %v113_v26 = vlaneseq }
   0xe   :  { %81 = vmatpush.msra.mxu0 %v80_v0  ;;  %v78_v2 = vld [vmem:[#allocation8 + $0x68] sm:$0xff]  ;;  %v77_v3 = vld [vmem:[#allocation8 + $0x60] sm:$0xff]  ;;  %v76_v4 = vld [vmem:[#allocation8 + $0x58] sm:$0xff]  ;;  %63 = vst.msk [vmem:[#allocation2] sm:$0xff] %vm62_vm0, %v268_v17  ;;  %v269_v21 = vmov 0   ;;  %vm124_vm2 = vcmask 64512  }
   0xf   :  { %v75_v5 = vld [vmem:[#allocation8 + $0x50] sm:$0xff]  ;;  %v74_v6 = vld [vmem:[#allocation8 + $0x48] sm:$0xff]  ;;  %v73_v7 = vld [vmem:[#allocation8 + $0x40] sm:$0xff]  ;;  %160 = vset.pattern.permute.xlu0 %v269_v21  ;;  %v114_v27 = vshrl.u32 %v113_v26, 7  ;;  %v116_v28 = vand.u32 127, %v113_v26  ;;  %s270_s0 = smov [#allocation9]  }
  0x10   :  { %82 = vmatpush.msra.mxu0 %v79_v1  ;;  %v72_v8 = vld [vmem:[#allocation8 + $0x38] sm:$0xff]  ;;  %v71_v9 = vld [vmem:[#allocation8 + $0x30] sm:$0xff]  ;;  %v70_v10 = vld [vmem:[#allocation8 + $0x28] sm:$0xff]  ;;  %s139_s2 = sshll.u32 %s270_s0, 4  ;;  %s141_s30 = sshll.u32 %s306_s3, 4  ;;  %vm132_vm3 = vcmask 57344   ;;  %s140_s2 = int_to_ptr.vmem [resolvable:$true] %s139_s2  ;;  %s142_s30 = int_to_ptr.hbm [resolvable:$true] %s141_s30 }
  0x11   :  { %v69_v11 = vld [vmem:[#allocation8 + $0x20] sm:$0xff]  ;;  %v68_v12 = vld [vmem:[#allocation8 + $0x18] sm:$0xff]  ;;  %v67_v13 = vld [vmem:[#allocation8 + $0x10] sm:$0xff]  ;;  %vm117_vm1 = vcmp.eq.s32.totalorder %v114_v27, %v116_v28 }
  0x12   :  { %83 = vmatpush.msra.mxu0 %v78_v2  ;;  %v66_v14 = vld [vmem:[#allocation8 + $0x8] sm:$0xff]  ;;  %v65_v15 = vld [vmem:[#allocation8] sm:$0xff]  ;;  %v64_v16 = vld [vmem:[#allocation6] sm:$0xff] }
  0x13   :  { %v102_v18 = vld [vmem:[#allocation3] sm:$0xff] }
  0x14   :  { %84 = vmatpush.msra.mxu0 %v77_v3 }
  0x15   :  { %v101_v22 = vld [vmem:[#allocation2] sm:$0xff] }
  0x16   :  { %85 = vmatpush.msra.mxu0 %v76_v4 }
  0x18   :  { %86 = vmatpush.msra.mxu0 %v75_v5 }
  0x1a   :  { %87 = vmatpush.msra.mxu0 %v74_v6 }
  0x1c   :  { %88 = vmatpush.msra.mxu0 %v73_v7 }
  0x1e   :  { %89 = vmatpush.msra.mxu0 %v72_v8 }
  0x20   :  { %90 = vmatpush.msra.mxu0 %v71_v9 }
  0x22   :  { %91 = vmatpush.msra.mxu0 %v70_v10 }
  0x24   :  { %92 = vmatpush.msra.mxu0 %v69_v11 }
  0x26   :  { %93 = vmatpush.msra.mxu0 %v68_v12 }
  0x28   :  { %94 = vmatpush.msra.mxu0 %v67_v13 }
  0x2a   :  { %95 = vmatpush.msra.mxu0 %v66_v14 }
  0x2c   :  { %96 = vmatpush.msra.mxu0 %v65_v15 }
  0x2d   :  { %97 = vmatmul.f32.vlgmr.msra.gmra.mxu0 %v64_v16 }
  0xaa   :  { %v98_v19 = vpop.f32.mrf.mxu0 }
  0xab   :  { %v103_v20 = vmul.f32 %v102_v18, %v98_v19 }
  0xad   :  { %104 = vadd.xlane.f32.xlu0 %v103_v20 }
 0x120   :  { %v105_v23 = vpop.xlane.xlu0 %104 }
 0x121   :  { %v106_v24 = vadd.f32 %v105_v23, %v101_v22 }
 0x123   :  { %108 = vst.msk [vmem:[#allocation2] sm:$0xff] %vm62_vm0, %v106_v24 }
 0x12a   :  { %v112_v25 = vld [vmem:[#allocation2] sm:$0xff] }
 0x12b   :  { %120 = vperm.xlu0 %160, %v112_v25  }
 0x19d   :  { %v121_v29 = vpop.permute.xlu0 %120 }
 0x19e   :  { %v123_v30 = vsel %vm117_vm1, %v121_v29, 0.0 }
 0x19f   :  { %v125_v31 = vsel %vm124_vm2, %v123_v30, 0.0 }
 0x1a0   :  { %v126_v32 = vrot.slane %v125_v31, 4 }
 0x1a2   :  { %v127_v33 = vadd.f32 %v126_v32, %v125_v31 }
 0x1a4   :  { %v128_v34 = vrot.slane %v127_v33, 2 }
 0x1a6   :  { %v129_v35 = vadd.f32 %v128_v34, %v127_v33 }
 0x1a8   :  { %v130_v36 = vrot.slane %v129_v35, 1 }
 0x1aa   :  { %v131_v37 = vadd.f32 %v130_v36, %v129_v35 }
 0x1ac   :  { %133 = vst.msk [vmem:[#allocation9] sm:$0x1] %vm132_vm3, %v131_v37 }
 0x1ad   :  { %144 = dma.vmem_to_hbm [thread:$0]  %s140_s2, 16, %s142_s30, [#allocation5]  }
 0x1ae   :  { %261 = dma.done.wait [#allocation5], 16  }
 0x1af   :  { %262 = vsyncadd [#allocation5], 4294967280 }
 0x1b0   :  { %149 = vsyncpa [#allocation4], 1 }
 0x1b1   :  { %150 = vsyncpa [#allocation7], 1 }
 0x1b2   :  { %151 = vsyncpa [#allocation5], 1 }

</bundles_post_ra>
